<compile_context>
chip_gen: v7x
topology: tpu7x:2x2x1
jax: 0.10.0
libtpu: 0.0.40
codegen_flags: <defaults>
</compile_context>

<pallas_src>
import jax
import jax.numpy as jnp
from jax import lax
from jax.experimental import pallas as pl
from jax.experimental.pallas import tpu as pltpu

LANES = 128


def _row_align(dtype):
    # Sublane-tile requirement by element width: f32 -> 8, bf16 -> 16, u8 -> 32.
    itemsize = jnp.dtype(dtype).itemsize
    return {4: 8, 2: 16, 1: 32}.get(itemsize, 8)


def _block_byte_budget():
    # Per-input, per-pipeline-buffer VMEM budget for one block.
    try:
        kind = jax.devices()[0].device_kind.lower()
    except Exception:
        kind = ""
    if "v6" in kind or "v7" in kind or "7x" in kind:
        return 4 << 20   # 2 inputs x 2 buffers = 16 MiB, fits 32 MiB scoped default
    return 2 << 20       # 8 MiB total, safe under v5e's 16 MiB scoped default


def _make_bce_kernel(block_rows, valid_rows, need_mask):
    def kernel(p_ref, t_ref, out_ref):
        # Cast in-kernel (no wrapper-side full-array cast pass).
        p = p_ref[...].astype(jnp.float32)
        t = t_ref[...].astype(jnp.float32)
        if need_mask:
            # The last grid block overhangs the array; out-of-bounds rows hold
            # garbage.  Force (p=1, t=1) there so those elements contribute
            # exactly 0 (the -100 clamp below keeps everything finite).
            row0 = pl.program_id(0) * block_rows
            row_ids = lax.broadcasted_iota(jnp.int32, p.shape, 0) + row0
            valid = row_ids < valid_rows
            p = jnp.where(valid, p, 1.0)
            t = jnp.where(valid, t, 1.0)
        # PyTorch's binary_cross_entropy clamps log() at -100 *before* the
        # blend; that ordering is what keeps p==1 / t==1 padding NaN-free.
        log_p = jnp.maximum(jnp.log(p), -100.0)
        log_1mp = jnp.maximum(jnp.log(1.0 - p), -100.0)
        bce = -(log_1mp + t * (log_p - log_1mp))
        # Sublane reduce only; the tiny cross-lane / cross-block reduction
        # happens in the wrapper (keeps output lane-dense, grid axis parallel).
        out_ref[...] = jnp.sum(bce, axis=0, keepdims=True)[None]
    return kernel


def bce_loss(pred, target, weight=None):
    """Mean binary cross-entropy over all elements (pred = probabilities)."""
    # `weight` accepted for signature parity with the PyTorch module; the
    # reference module builds nn.BCELoss() without a weight, so it is unused.
    del weight
    pred = jnp.asarray(pred)
    target = jnp.asarray(target)
    assert pred.shape == target.shape
    n = pred.size
    if n == 0:
        # Matches PyTorch: mean over an empty tensor is NaN.
        return jnp.float32(jnp.nan)

    # bool loads are awkward on TPU; widen to uint8 (still 1 B/elem).
    if pred.dtype == jnp.bool_:
        pred = pred.astype(jnp.uint8)
    if target.dtype == jnp.bool_:
        target = target.astype(jnp.uint8)

    flat_p = pred.reshape(-1)
    flat_t = target.reshape(-1)

    # Pad only to the next multiple of 128 lanes (<= 127 elements, rare path).
    # p=1, t=1 padding contributes exactly 0 to the sum.
    rem = n % LANES
    if rem:
        pad = LANES - rem
        flat_p = jnp.pad(flat_p, (0, pad), constant_values=1)
        flat_t = jnp.pad(flat_t, (0, pad), constant_values=1)

    rows = flat_p.size // LANES
    p2 = flat_p.reshape(rows, LANES)
    t2 = flat_t.reshape(rows, LANES)

    align = max(_row_align(p2.dtype), _row_align(t2.dtype))
    bytes_per_row = LANES * max(jnp.dtype(p2.dtype).itemsize,
                                jnp.dtype(t2.dtype).itemsize)
    max_rows = (_block_byte_budget() // bytes_per_row) // align * align
    max_rows = max(align, max_rows)

    grid_n = max(1, -(-rows // max_rows))
    # Give both TensorCores work on multi-TC chips (v7x); harmless elsewhere.
    if grid_n == 1 and rows >= 2 * align:
        grid_n = 2
    block_rows = -(-rows // grid_n)                  # ceil(rows / grid_n)
    block_rows = -(-block_rows // align) * align     # round up to dtype tile
    grid_n = -(-rows // block_rows)                  # re-derive after rounding
    need_mask = (rows % block_rows) != 0

    kernel = _make_bce_kernel(block_rows, rows, need_mask)
    in_blk = pl.BlockSpec((block_rows, LANES), lambda i: (i, 0))

    partials = pl.pallas_call(
        kernel,
        out_shape=jax.ShapeDtypeStruct((grid_n, 1, LANES), jnp.float32),
        grid_spec=pltpu.PrefetchScalarGridSpec(
            num_scalar_prefetch=0,
            grid=(grid_n,),
            in_specs=[in_blk, in_blk],
            out_specs=pl.BlockSpec((1, 1, LANES), lambda i: (i, 0, 0)),
        ),
        compiler_params=pltpu.CompilerParams(
            dimension_semantics=("parallel",),
        ),
    )(p2, t2)

    total = jnp.sum(partials)          # tiny: grid_n * 128 f32 values
    return total / jnp.float32(n)      # reduction='mean'


def _reference(pred, target):
    p = jnp.asarray(pred, jnp.float32)
    t = jnp.asarray(target, jnp.float32)
    bce = -(t * jnp.maximum(jnp.log(p), -100.0)
            + (1.0 - t) * jnp.maximum(jnp.log(1.0 - p), -100.0))
    return bce.mean()


if __name__ == "__main__":
    key = jax.random.PRNGKey(0)
    k1, k2 = jax.random.split(key)
    # NCHW probabilities and binary targets, small shapes.
    N, C, H, W = 2, 4, 16, 16
    pred = jax.random.uniform(k1, (N, C, H, W), jnp.float32,
                              minval=0.01, maxval=0.99)
    target = (jax.random.uniform(k2, (N, C, H, W)) > 0.5).astype(jnp.float32)

    loss = bce_loss(pred, target)
    loss = jax.block_until_ready(loss)

    ref = _reference(pred, target)
    assert jnp.allclose(loss, ref, rtol=1e-5, atol=1e-5), (loss, ref)
    print("KERNEL_OK")
</pallas_src>

<mosaic_0001>
module attributes {stable_mosaic.version = 11 : i64} {
  func.func @kernel(%arg0: i32, %arg1: memref<8x128xf32, #tpu.memory_space<vmem>>, %arg2: memref<8x128xf32, #tpu.memory_space<vmem>>, %arg3: memref<1x1x128xf32, #tpu.memory_space<vmem>>) attributes {dimension_semantics = [#tpu.dimension_semantics<parallel>], iteration_bounds = array<i64: 2>, scalar_prefetch = 0 : i64, scratch_operands = 0 : i64, tpu.core_type = #tpu.core_type<tc>, window_params = [{transform_indices = @transform_0, window_bounds = array<i64: 8, 128>}, {transform_indices = @transform_1, window_bounds = array<i64: 8, 128>}, {transform_indices = @transform_2, window_bounds = array<i64: 1, 1, 128>}]} {
    %c0 = arith.constant 0 : index
    %c0_0 = arith.constant 0 : index
    %0 = vector.load %arg1[%c0, %c0_0] : memref<8x128xf32, #tpu.memory_space<vmem>>, vector<8x128xf32>
    %c0_1 = arith.constant 0 : index
    %c0_2 = arith.constant 0 : index
    %1 = vector.load %arg2[%c0_1, %c0_2] : memref<8x128xf32, #tpu.memory_space<vmem>>, vector<8x128xf32>
    %2 = math.log %0 : vector<8x128xf32>
    %cst = arith.constant -1.000000e+02 : f32
    %3 = vector.broadcast %cst : f32 to vector<8x128xf32>
    %4 = arith.maximumf %2, %3 : vector<8x128xf32>
    %cst_3 = arith.constant 1.000000e+00 : f32
    %5 = vector.broadcast %cst_3 : f32 to vector<8x128xf32>
    %6 = arith.subf %5, %0 : vector<8x128xf32>
    %7 = math.log %6 : vector<8x128xf32>
    %cst_4 = arith.constant -1.000000e+02 : f32
    %8 = vector.broadcast %cst_4 : f32 to vector<8x128xf32>
    %9 = arith.maximumf %7, %8 : vector<8x128xf32>
    %10 = arith.subf %4, %9 : vector<8x128xf32>
    %11 = arith.mulf %1, %10 : vector<8x128xf32>
    %12 = arith.addf %9, %11 : vector<8x128xf32>
    %cst_5 = arith.constant 0.000000e+00 : f32
    %13 = vector.broadcast %cst_5 : f32 to vector<8x128xf32>
    %14 = arith.subf %13, %12 : vector<8x128xf32>
    %cst_6 = arith.constant dense<0.000000e+00> : vector<128xf32>
    %15 = vector.multi_reduction <add>, %14, %cst_6 [0] : vector<8x128xf32> to vector<128xf32>
    %16 = vector.shape_cast %15 : vector<128xf32> to vector<1x128xf32>
    %17 = vector.shape_cast %16 : vector<1x128xf32> to vector<1x1x128xf32>
    %c0_7 = arith.constant 0 : index
    %c0_8 = arith.constant 0 : index
    %c0_9 = arith.constant 0 : index
    %18 = vector.load %arg3[%c0_7, %c0_8, %c0_9] : memref<1x1x128xf32, #tpu.memory_space<vmem>>, vector<1x1x128xf32>
    tpu.vector_store %arg3[%c0_7, %c0_8, %c0_9], %17 {strides = array<i32>} : memref<1x1x128xf32, #tpu.memory_space<vmem>>, vector<1x1x128xf32>,
    return
  }
  func.func @transform_0(%arg0: i32) -> (i32, i32) {
    %c0_i32 = arith.constant 0 : i32
    %c0_i32_0 = arith.constant 0 : i32
    return %arg0, %c0_i32 : i32, i32
  }
  func.func @transform_1(%arg0: i32) -> (i32, i32) {
    %c0_i32 = arith.constant 0 : i32
    %c0_i32_0 = arith.constant 0 : i32
    return %arg0, %c0_i32 : i32, i32
  }
  func.func @transform_2(%arg0: i32) -> (i32, i32, i32) {
    %c0_i32 = arith.constant 0 : i32
    %c0_i32_0 = arith.constant 0 : i32
    %c0_i32_1 = arith.constant 0 : i32
    return %arg0, %c0_i32, %c0_i32_0 : i32, i32, i32
  }
}

</mosaic_0001>

<bundles_post_ra>
// kernel: tpu_custom_call.1
= control target key start
LH: loop header
LB: loop body
LE: loop exit
PB: predicated region body
PF: predicated region fallthrough
CT: control target
= control target key end

     0   :  { %7 = vsyncpa [#allocation3], 0  ;;  %s745_s0 = inlined_call_operand.hbm [shape: f32[16,128], index: 0, kind: input, shape index: {}]   ;;  %s746_s1 = inlined_call_operand.hbm [shape: f32[16,128], index: 1, kind: input, shape index: {}]   ;;  %s747_s2 = inlined_call_operand.hbm [shape: f32[2,1,128], index: 2, kind: output, shape index: {}]  }
   0x1   :  { %9 = vsyncpa [#allocation3 + $0x1], 0 }
   0x2   :  { %10 = vsyncpa [#allocation6], 0 }
   0x3   :  { %12 = vsyncpa [#allocation6 + $0x1], 0 }
   0x4   :  { %13 = vsyncpa [#allocation4], 0 }
   0x5   :  { %15 = vsyncpa [#allocation4 + $0x1], 0  ;;  %s535_s9 = smov 0   ;;  %s537_s10 = smov 0  }
   0x6   :  { %s539_s11 = smov 0   ;;  %s541_s12 = smov 0  }
   0x7 LB: > { %s556_s13 = sadd.s32 4294967295, %s515_s12   ;;  %s317_s14 = sadd.s32 4294967294, %s515_s12   ;;  %s515_s12 = sphi %s541_s12, %s766_s12   ;;  %s511_s11 = sphi %s539_s11, %s765_s11   ;;  %s507_s10 = sphi %s537_s10, %s764_s10   ;;  %s503_s9 = sphi %s535_s9, %s763_s9  }
   0x8   : > { %s560_s15 = sadd.s32 1, %s515_s12   ;;  %s28_s16 = sadd.s32 1, %s511_s11 }
   0x9   : > { %s25_s17 = ssub.s32 %s515_s12, %s560_s15  ;;  %p35_p0 = scmp.ne.s32.totalorder %s511_s11, %s507_s10 }
   0xa   : > { %p26_p1 = scmp.eq.s32.totalorder %s25_s17, 0  ;;  %p36_p2 = scmp.eq.s32.totalorder %s515_s12, 0 }
   0xb   : > { %p41_p3 = scmp.ne.s32.totalorder %s507_s10, %s503_s9  ;;  %p42_p4 = scmp.eq.s32.totalorder %s556_s13, 0 }
   0xc   : > { %s572_s18 = scalar_select %p26_p1, %s511_s11, %s28_s16  }
   0xd   : > { %p574_p5 = por %p36_p2, %p35_p0  ;;  %p578_p6 = por %p42_p4, %p41_p3 }
   0xe   : > { %p91_p7 = scmp.eq.s32.totalorder %s556_s13, 1  ;;  %p97_p8 = scmp.eq.s32.totalorder %s317_s14, 1 }
   0xf   : > { %s751_s20 = scalar_select %p578_p6, 1, 0 }
  0x10   : > { %p347_p10 = scmp.lt.s32.totalorder %s515_s12, 2  ;;  %p585_p11 = por %p91_p7, %p35_p0 }
  0x11   : > { %p589_p12 = por %p97_p8, %p41_p3  ;;  %s594_s23 = sand.u32 1, %s511_s11  }
  0x12   : > { %s752_s21 = scalar_select %p585_p11, 1, 0 }
  0x13   : > { %s753_s22 = scalar_select %p589_p12, 1, 0 }
  0x14   : > { %s321_s24 = sshll.u32 %s515_s12, 7  ;;  %s320_s25 = sshll.u32 %s594_s23, 3 }
  0x15   : > { %s603_s28 = scalar_lea.hbm %s745_s0, %s321_s24  ;;  %s121_s29 = scalar_lea.vmem [#allocation2], %s320_s25 }
  0x16   : > { %s128_s30 = sshll.u32 %s121_s29, 4  ;;  %p609_p13 = pnand %p347_p10, %p574_p5  ;;  %s613_s30 = int_to_ptr.vmem [resolvable:$true] %s128_s30 }
  0x17   : > { %s118_s4 = scalar_lea.sflag [#allocation3], %s594_s23  ;;  %s385_s5 = scalar_lea.hbm %s603_s28, 128 }
  0x18   : > { %p386_p2 = scmp.ne.s32.totalorder %s603_s28, %s385_s5  ;;  %p387_p3 = pneg %p609_p13 }
  0x19   : > { %s390_s8 = scalar_lea.hbm %s745_s0, 256  ;;  %p391_p5 = scmp.lt.u32.totalorder %s603_s28, %s745_s0 }
  0x1a   : > { %p388_p4 = pnand %p387_p3, %p386_p2  ;;  %p392_p8 = scmp.lt.u32.totalorder %s390_s8, %s385_s5 }
  0x1b   : > { %p394_p9 = scmp.lt.u32.totalorder %s385_s5, %s603_s28 }
  0x1c   : > { %p389_p7 = pneg %p388_p4  ;;  %p393_p10 = por %p392_p8, %p391_p5 }
  0x1e   : > { %p395_p0 = por %p394_p9, %p393_p10 }
  0x20   : > { %p396_p1 = pnand %p395_p0, %p389_p7 }
  0x22   : > { %399 = shalt.err (!%p396_p1)
}
  0x23   : > { %s400_s17 = scalar_lea.vmem %s613_s30, 128  ;;  %s517_s19 = smov [#allocation2]  }
  0x24   : > { %p401_p2 = scmp.ne.s32.totalorder %s613_s30, %s400_s17  ;;  %s405_s26 = sshll.u32 %s517_s19, 4  ;;  %s406_s26 = int_to_ptr.vmem [resolvable:$false] %s405_s26 }
  0x25   : > { %s407_s27 = scalar_lea.vmem %s406_s26, 256  ;;  %p408_p11 = scmp.lt.s32.totalorder %s613_s30, %s406_s26 }
  0x26   : > { %p403_p4 = pnand %p401_p2, %p387_p3  ;;  %p409_p5 = scmp.lt.s32.totalorder %s407_s27, %s400_s17 }
  0x28   : > { %p404_p12 = pneg %p403_p4  ;;  %p410_p8 = por %p409_p5, %p408_p11 }
  0x2a   : > { %p411_p9 = pnand %p410_p8, %p404_p12 }
  0x2c   : > { %414 = shalt.err (!%p411_p9)
}
  0x2d   : > { %339 = dma.hbm_to_vmem [thread:$0]  (!%p609_p13), %s603_s28, 128, %s613_s30, %s118_s4  }
  0x2e   : > { %p755_p0 = scmp.lt.s32.totalorder %s515_s12, 3  ;;  %p756_p1 = scmp.ge.s32.totalorder %s515_s12, 1 }
  0x2f   : > { %s656_s7 = scalar_lea.hbm %s746_s1, %s321_s24  ;;  %s139_s8 = scalar_lea.vmem [#allocation5], %s320_s25 }
  0x30   : > { %p647_p7 = pnand %p756_p1, %p755_p0  ;;  %s146_s14 = sshll.u32 %s139_s8, 4  ;;  %s147_s14 = int_to_ptr.vmem [resolvable:$true] %s146_s14 }
  0x31   : > { %s136_s28 = scalar_lea.sflag [#allocation6], %s594_s23  ;;  %s415_s30 = scalar_lea.hbm %s656_s7, 128 }
  0x32   : > { %s757_s29 = scalar_select %p647_p7, 1, 0 }
  0x33   : > { %p416_p11 = scmp.ne.s32.totalorder %s656_s7, %s415_s30  ;;  %s420_s24 = scalar_lea.hbm %s746_s1, 256 }
  0x34   : > { %p421_p2 = scmp.lt.u32.totalorder %s656_s7, %s746_s1  ;;  %p422_p4 = scmp.lt.u32.totalorder %s420_s24, %s415_s30 }
  0x35   : > { %p418_p12 = pnand %p416_p11, %p387_p3  ;;  %p424_p8 = scmp.lt.u32.totalorder %s415_s30, %s656_s7 }
  0x36   : > { %p423_p5 = por %p422_p4, %p421_p2 }
  0x37   : > { %p419_p10 = pneg %p418_p12 }
  0x38   : > { %p425_p9 = por %p424_p8, %p423_p5 }
  0x3a   : > { %p426_p0 = pnand %p425_p9, %p419_p10 }
  0x3c   : > { %429 = shalt.err (!%p426_p0)
}
  0x3d   : > { %s430_s23 = scalar_lea.vmem %s147_s14, 128  ;;  %s518_s25 = smov [#allocation5]  }
  0x3e   : > { %p431_p1 = scmp.ne.s32.totalorder %s147_s14, %s430_s23  ;;  %s435_s26 = sshll.u32 %s518_s25, 4  ;;  %s436_s26 = int_to_ptr.vmem [resolvable:$false] %s435_s26 }
  0x3f   : > { %s437_s27 = scalar_lea.vmem %s436_s26, 256  ;;  %p438_p6 = scmp.lt.s32.totalorder %s147_s14, %s436_s26 }
  0x40   : > { %p433_p11 = pnand %p431_p1, %p387_p3  ;;  %p439_p7 = scmp.lt.s32.totalorder %s437_s27, %s430_s23 }
  0x42   : > { %p434_p12 = pneg %p433_p11  ;;  %p440_p2 = por %p439_p7, %p438_p6 }
  0x44   : > { %p441_p4 = pnand %p440_p2, %p434_p12 }
  0x46   : > { %444 = shalt.err (!%p441_p4)
}
  0x47   : > { %342 = dma.hbm_to_vmem [thread:$0]  (!%p609_p13), %s656_s7, 128, %s147_s14, %s136_s28  }
  0x48   : > { %p758_p10 = scmp.ne.s32.totalorder %s757_s29, 0 }
  0x49   : > { %s683_s5 = sand.u32 (!%p758_p10), 1, %s507_s10   ;;  %p759_p3 = scmp.ne.s32.totalorder (!%p758_p10), %s751_s20, 0 }
  0x4a   : > { %155 = sbr.rel (%p758_p10) target bundleno = 136 (0x88), region = 28  ;;  %s325_s6 = sshll.u32 (!%p758_p10), %s683_s5, 3 }
  0x4b   : > { %s158_s8 = scalar_lea.sflag (!%p758_p10), [#allocation3], %s683_s5  ;;  %s161_s30 = scalar_lea.vmem (!%p758_p10), [#allocation2], %s325_s6 }
  0x51   : > { %490 = dma.done.wait (%p759_p3), %s158_s8, 128  }
  0x52   : > { %492 = vsyncadd (%p759_p3), %s158_s8, 4294967168  ;;  %s167_s3 = scalar_lea.sflag [#allocation6], %s683_s5  ;;  %s170_s7 = scalar_lea.vmem [#allocation5], %s325_s6 }
  0x53   : > { %494 = dma.done.wait (%p759_p3), %s167_s3, 128  }
  0x54   : > { %496 = vsyncadd (%p759_p3), %s167_s3, 4294967168  ;;  %v195_v0 = vld [vmem:[%s161_s30] sm:$0xff]  ;;  %v196_v8 = vld [vmem:[%s170_s7] sm:$0xff]  ;;  %s194_s20 = scalar_lea.vmem [#allocation7], %s683_s5  ;;  %s327_s14 = sshll.u32 %s556_s13, 4 }
  0x55   : > { %381 = vlog2.f32 %v195_v0  ;;  %v200_v1 = vsub.f32 1.0, %v195_v0  ;;  %s228_s29 = sshll.u32 %s194_s20, 4  ;;  %s703_s16 = scalar_lea.hbm %s747_s2, %s327_s14  ;;  %s698_s29 = int_to_ptr.vmem [resolvable:$true] %s228_s29 }
  0x56   : > { %s216_s24 = scalar_lea.sflag [#allocation4], %s683_s5  ;;  %s445_s17 = scalar_lea.vmem %s698_s29, 16 }
  0x57   : > { %383 = vlog2.f32 %v200_v1  ;;  %p446_p6 = scmp.ne.s32.totalorder %s698_s29, %s445_s17  ;;  %p760_p13 = scmp.ne.s32.totalorder %s752_s21, 0 }
  0x58   : > { %s519_s13 = smov [#allocation7]  }
  0x59   : > { %p447_p7 = pnand %p446_p6, %p760_p13  ;;  %s449_s19 = sshll.u32 %s519_s13, 4  ;;  %s450_s19 = int_to_ptr.vmem [resolvable:$false] %s449_s19 }
  0x5a   : > { %s451_s23 = scalar_lea.vmem %s450_s19, 32  ;;  %p452_p8 = scmp.lt.s32.totalorder %s698_s29, %s450_s19 }
  0x5b   : > { %p448_p5 = pneg %p447_p7  ;;  %p453_p9 = scmp.lt.s32.totalorder %s451_s23, %s445_s17 }
  0x5d   : > { %p454_p0 = por %p453_p9, %p452_p8 }
  0x5f   : > { %v382_v2 = vpop.eup %381  ;;  %p455_p1 = pnand %p454_p0, %p448_p5 }
  0x60   : > { %v198_v3 = vmul.f32 0.6931472, %v382_v2 }
  0x61   : > { %v384_v4 = vpop.eup %383 }
  0x62   : > { %v199_v5 = vmax.f32 %v198_v3, -100.0  ;;  %v202_v6 = vmul.f32 0.6931472, %v384_v4 }
  0x64   : > { %v203_v7 = vmax.f32 %v202_v6, -100.0 }
  0x66   : > { %v204_v9 = vsub.f32 %v199_v5, %v203_v7 }
  0x68   : > { %v205_v10 = vmul.f32 %v204_v9, %v196_v8 }
  0x6a   : > { %v206_v11 = vadd.f32 %v205_v10, %v203_v7 }
  0x6c   : > { %v207_v12 = vsub.f32 0.0, %v206_v11 }
  0x6e   : > { %v208_v13 = vrot.slane %v207_v12, 4 }
  0x70   : > { %v209_v14 = vadd.f32 %v208_v13, %v207_v12 }
  0x72   : > { %v210_v15 = vrot.slane %v209_v14, 2 }
  0x74   : > { %v211_v16 = vadd.f32 %v210_v15, %v209_v14 }
  0x76   : > { %v212_v17 = vrot.slane %v211_v16, 1 }
  0x78   : > { %v213_v18 = vadd.f32 %v212_v17, %v211_v16 }
  0x7a   : > { %214 = vst [vmem:[%s194_s20] sm:$0x1] %v213_v18 }
  0x7b   : > { %458 = shalt.err (!%p455_p1)
}
  0x7c   : > { %s459_s25 = scalar_lea.hbm %s703_s16, 16  ;;  %s463_s5 = scalar_lea.hbm %s747_s2, 32 }
  0x7d   : > { %p460_p11 = scmp.ne.s32.totalorder %s703_s16, %s459_s25  ;;  %p464_p4 = scmp.lt.u32.totalorder %s703_s16, %s747_s2 }
  0x7e   : > { %p465_p10 = scmp.lt.u32.totalorder %s463_s5, %s459_s25  ;;  %p467_p6 = scmp.lt.u32.totalorder %s459_s25, %s703_s16 }
  0x7f   : > { %p461_p12 = pnand %p460_p11, %p760_p13 }
  0x80   : > { %p466_p3 = por %p465_p10, %p464_p4 }
  0x81   : > { %p462_p2 = pneg %p461_p12 }
  0x82   : > { %p468_p7 = por %p467_p6, %p466_p3 }
  0x84   : > { %p469_p5 = pnand %p468_p7, %p462_p2 }
  0x86   : > { %472 = shalt.err (!%p469_p5)
}
  0x87   : > { %334 = dma.vmem_to_hbm [thread:$0]  (%p760_p13), %s698_s29, 16, %s703_s16, %s216_s24  }
  0x88 PF: > { %s240_s30 = sand.u32 1, %s503_s9   ;;  %p761_p8 = scmp.ne.s32.totalorder %s753_s22, 0 }
  0x89   : > { %p762_p9 = scmp.ge.s32.totalorder %s515_s12, 2  ;;  %s241_s3 = scalar_lea.sflag [#allocation4], %s240_s30 }
  0x8b   : > { %p344_p0 = pnand %p762_p9, %p761_p8 }
  0x8d   : > { %498 = dma.done.wait (!%p344_p0), %s241_s3, 16  }
  0x8e   : > { %500 = vsyncadd (!%p344_p0), %s241_s3, 4294967280  ;;  %p18_p1 = scmp.ge.s32.totalorder %s560_s15, 4   ;;  %s763_s9 = smov %s507_s10 }
  0x8f   : > { %s764_s10 = smov %s511_s11  ;;  %s765_s11 = smov %s572_s18 }
  0x90   : > { %s766_s12 = smov %s560_s15  ;;  %20 = sbr.rel (!%p18_p1) target bundleno = 7 (0x7), region = 86 }
  0x97   :  { %245 = vsyncpa [#allocation3], 1 }
  0x98   :  { %247 = vsyncpa [#allocation3 + $0x1], 1 }
  0x99   :  { %248 = vsyncpa [#allocation6], 1 }
  0x9a   :  { %250 = vsyncpa [#allocation6 + $0x1], 1 }
  0x9b   :  { %251 = vsyncpa [#allocation4], 1 }
  0x9c   :  { %253 = vsyncpa [#allocation4 + $0x1], 1 }

</bundles_post_ra>
